<compile_context>
chip_gen: v7x
topology: tpu7x:2x2x1
jax: 0.10.0
libtpu: 0.0.40
codegen_flags: <defaults>
</compile_context>

<pallas_src>
import functools

import jax
import jax.numpy as jnp
from jax.experimental import pallas as pl
from jax.experimental.pallas import tpu as pltpu


def _gru_fc_kernel(x_ref, wih_ref, whh_ref, bi_ref, bhn_ref, fcw_ref, fcb_ref,
                   out_ref, gi_r_ref, gi_z_ref, gi_n_ref, h_ref, *, batch, seq):
    """Single grid step: hoisted input projection + sequential GRU + FC head.

    x_ref    : (seq*B, H)  bf16   embedded inputs, time-major rows (t*B + b)
    wih_ref  : (3, H, H)   bf16   input->gate weights, [g] = W_ig^T (gate order r,z,n)
    whh_ref  : (3, H, H)   bf16   hidden->gate weights, [g] = W_hg^T
    bi_ref   : (3, 1, H)   f32    [b_ir+b_hr, b_iz+b_hz, b_in]
    bhn_ref  : (1, H)      f32    b_hn (kept separate: multiplied by r)
    fcw_ref  : (H, Opad)   bf16   fc weight^T, zero-padded to 128 lanes
    fcb_ref  : (1, Opad)   f32    fc bias, zero-padded
    out_ref  : (B, Opad)   f32    fc(h_final), padded columns are zero
    gi_*_ref : (seq*B, H)  f32    VMEM scratch: per-gate input projections (all t)
    h_ref    : (B, H)      f32    VMEM scratch: hidden state
    """
    # ---- Phase 1: input projection for ALL timesteps (one big matmul per gate) ----
    x = x_ref[...]                                                   # (seq*B, H) bf16
    gi_r_ref[...] = jnp.dot(x, wih_ref[0], preferred_element_type=jnp.float32) + bi_ref[0]
    gi_z_ref[...] = jnp.dot(x, wih_ref[1], preferred_element_type=jnp.float32) + bi_ref[1]
    gi_n_ref[...] = jnp.dot(x, wih_ref[2], preferred_element_type=jnp.float32) + bi_ref[2]

    # Loop-invariant loads hoisted out of the recurrence.
    w_hr = whh_ref[0]                                                # (H, H) bf16
    w_hz = whh_ref[1]
    w_hn = whh_ref[2]
    b_hn = bhn_ref[...]                                              # (1, H) f32

    h_ref[...] = jnp.zeros_like(h_ref)

    # ---- Phase 2: sequential GRU recurrence (only h @ W_hh on the critical path) ----
    @pl.loop(0, seq)
    def _(t):
        off = t * batch
        gi_r = gi_r_ref[pl.ds(off, batch), :]                        # (B, H) f32
        gi_z = gi_z_ref[pl.ds(off, batch), :]
        gi_n = gi_n_ref[pl.ds(off, batch), :]

        h = h_ref[...]                                               # (B, H) f32
        hb = h.astype(jnp.bfloat16)
        h_r = jnp.dot(hb, w_hr, preferred_element_type=jnp.float32)
        h_z = jnp.dot(hb, w_hz, preferred_element_type=jnp.float32)
        h_n = jnp.dot(hb, w_hn, preferred_element_type=jnp.float32)

        r = jax.nn.sigmoid(gi_r + h_r)
        z = jax.nn.sigmoid(gi_z + h_z)
        n = jnp.tanh(gi_n + r * (h_n + b_hn))
        h_ref[...] = n + z * (h - n)                                 # == (1-z)*n + z*h

    # ---- Phase 3: FC head on the final hidden state (lane-dense 128-wide store) ----
    fc = (jnp.dot(h_ref[...].astype(jnp.bfloat16), fcw_ref[...],
                  preferred_element_type=jnp.float32) + fcb_ref[...])
    out_ref[...] = fc.astype(out_ref.dtype)


def rnn_classifier_forward(tokens, params):
    """tokens: (batch, seq) int32. Returns (n_layers=1, batch, output_size) float32."""
    emb = params["embedding"]                    # (V, H)
    w_ih = params["w_ih"]                        # (3H, H) torch layout, gates [r|z|n]
    w_hh = params["w_hh"]                        # (3H, H)
    b_ih = params["b_ih"]                        # (3H,)
    b_hh = params["b_hh"]                        # (3H,)
    fc_w = params["fc_w"]                        # (O, H)
    fc_b = params["fc_b"]                        # (O,)

    batch, seq = tokens.shape
    H = emb.shape[1]
    O = fc_w.shape[0]
    O_pad = pl.cdiv(O, 128) * 128                # lane-dense output width

    # ---- glue / layout prep (one-time) ----
    # input.t() then embedding lookup -> (seq, batch, H); flatten time*batch for the
    # hoisted input projection.  TODO(synk): embedding gather stays in XLA glue.
    embedded = emb[tokens.T]                                              # (seq, B, H)
    x2d = embedded.reshape(seq * batch, H).astype(jnp.bfloat16)           # (seq*B, H)

    w_ih_g = w_ih.reshape(3, H, H).transpose(0, 2, 1).astype(jnp.bfloat16)  # [g]=W_ig^T
    w_hh_g = w_hh.reshape(3, H, H).transpose(0, 2, 1).astype(jnp.bfloat16)

    b_i = jnp.stack([b_ih[0:H] + b_hh[0:H],            # r: fold input+hidden biases
                     b_ih[H:2 * H] + b_hh[H:2 * H],    # z: fold input+hidden biases
                     b_ih[2 * H:3 * H]],               # n: input bias only
                    axis=0)[:, None, :].astype(jnp.float32)               # (3, 1, H)
    b_hn = b_hh[2 * H:3 * H][None, :].astype(jnp.float32)                 # (1, H)

    fcw = jnp.zeros((H, O_pad), jnp.bfloat16).at[:, :O].set(fc_w.T.astype(jnp.bfloat16))
    fcb = jnp.zeros((1, O_pad), jnp.float32).at[0, :O].set(fc_b)

    kernel = functools.partial(_gru_fc_kernel, batch=batch, seq=seq)

    grid_spec = pltpu.PrefetchScalarGridSpec(
        num_scalar_prefetch=0,
        grid=(1,),                                           # single step; time loop is in-kernel
        in_specs=[
            pl.BlockSpec((seq * batch, H), lambda i: (0, 0)),      # embedded (all t)
            pl.BlockSpec((3, H, H), lambda i: (0, 0, 0)),          # W_ih gates
            pl.BlockSpec((3, H, H), lambda i: (0, 0, 0)),          # W_hh gates
            pl.BlockSpec((3, 1, H), lambda i: (0, 0, 0)),          # folded biases
            pl.BlockSpec((1, H), lambda i: (0, 0)),                # b_hn
            pl.BlockSpec((H, O_pad), lambda i: (0, 0)),            # fc W^T (padded)
            pl.BlockSpec((1, O_pad), lambda i: (0, 0)),            # fc b (padded)
        ],
        out_specs=pl.BlockSpec((batch, O_pad), lambda i: (0, 0)),
        scratch_shapes=[
            pltpu.VMEM((seq * batch, H), jnp.float32),   # gi_r for all timesteps
            pltpu.VMEM((seq * batch, H), jnp.float32),   # gi_z
            pltpu.VMEM((seq * batch, H), jnp.float32),   # gi_n
            pltpu.VMEM((batch, H), jnp.float32),         # hidden state
        ],
    )

    out_padded = pl.pallas_call(
        kernel,
        out_shape=jax.ShapeDtypeStruct((batch, O_pad), jnp.float32),
        grid_spec=grid_spec,
        compiler_params=pltpu.CompilerParams(
            dimension_semantics=("arbitrary",)),
    )(x2d, w_ih_g, w_hh_g, b_i, b_hn, fcw, fcb)

    return out_padded[None, :, :O]               # (n_layers=1, batch, output_size)


def _reference_forward(tokens, params):
    """Pure-JAX reference replicating torch.nn.GRU semantics (gate order r,z,n),
    mirroring the kernel's bf16 matmul operands / f32 accumulation."""
    emb = params["embedding"]
    H = emb.shape[1]
    w_ih = params["w_ih"].astype(jnp.bfloat16)
    w_hh = params["w_hh"].astype(jnp.bfloat16)
    b_ih, b_hh = params["b_ih"], params["b_hh"]
    fc_w = params["fc_w"].astype(jnp.bfloat16)
    fc_b = params["fc_b"]

    embedded = emb[tokens.T].astype(jnp.bfloat16)                  # (seq, B, H)
    h = jnp.zeros((tokens.shape[0], H), jnp.float32)

    def step(h, x):
        gi = jnp.dot(x, w_ih.T, preferred_element_type=jnp.float32) + b_ih
        gh = jnp.dot(h.astype(jnp.bfloat16), w_hh.T,
                     preferred_element_type=jnp.float32) + b_hh
        r = jax.nn.sigmoid(gi[:, :H] + gh[:, :H])
        z = jax.nn.sigmoid(gi[:, H:2 * H] + gh[:, H:2 * H])
        n = jnp.tanh(gi[:, 2 * H:] + r * gh[:, 2 * H:])
        return (1.0 - z) * n + z * h, None

    h, _ = jax.lax.scan(step, h, embedded)
    out = jnp.dot(h.astype(jnp.bfloat16), fc_w.T,
                  preferred_element_type=jnp.float32) + fc_b
    return out[None]                                               # (1, B, O)


def make_params(key, input_size, hidden_size, output_size):
    """PyTorch-layout parameters: w_ih/w_hh (3H, H) with gate order [r | z | n]."""
    k = jax.random.split(key, 7)
    s = 1.0 / (hidden_size ** 0.5)
    return {
        "embedding": jax.random.normal(k[0], (input_size, hidden_size), jnp.float32),
        "w_ih": jax.random.uniform(k[1], (3 * hidden_size, hidden_size), jnp.float32, -s, s),
        "w_hh": jax.random.uniform(k[2], (3 * hidden_size, hidden_size), jnp.float32, -s, s),
        "b_ih": jax.random.uniform(k[3], (3 * hidden_size,), jnp.float32, -s, s),
        "b_hh": jax.random.uniform(k[4], (3 * hidden_size,), jnp.float32, -s, s),
        "fc_w": jax.random.uniform(k[5], (output_size, hidden_size), jnp.float32, -s, s),
        "fc_b": jax.random.uniform(k[6], (output_size,), jnp.float32, -s, s),
    }


if __name__ == "__main__":
    batch, seq = 2, 8
    input_size, hidden_size, output_size = 32, 32, 16   # vocab, H, num classes

    key = jax.random.PRNGKey(0)
    k_tok, k_par = jax.random.split(key)
    tokens = jax.random.randint(k_tok, (batch, seq), 0, input_size, jnp.int32)
    params = make_params(k_par, input_size, hidden_size, output_size)

    forward = jax.jit(rnn_classifier_forward)
    out = jax.block_until_ready(forward(tokens, params))

    ref = jax.block_until_ready(_reference_forward(tokens, params))
    assert out.shape == (1, batch, output_size), out.shape
    max_err = float(jnp.abs(out - ref).max())
    assert jnp.allclose(out, ref, atol=1e-3, rtol=1e-3), max_err

    print("KERNEL_OK")
</pallas_src>

<mosaic_0001>
module attributes {stable_mosaic.version = 11 : i64} {
  func.func @_gru_fc_kernel(%arg0: i32, %arg1: memref<16x32xbf16, #tpu.memory_space<vmem>>, %arg2: memref<3x32x32xbf16, #tpu.memory_space<vmem>>, %arg3: memref<3x32x32xbf16, #tpu.memory_space<vmem>>, %arg4: memref<3x1x32xf32, #tpu.memory_space<vmem>>, %arg5: memref<1x32xf32, #tpu.memory_space<vmem>>, %arg6: memref<32x128xbf16, #tpu.memory_space<vmem>>, %arg7: memref<1x128xf32, #tpu.memory_space<vmem>>, %arg8: memref<2x128xf32, #tpu.memory_space<vmem>>, %arg9: memref<16x32xf32, #tpu.memory_space<vmem>>, %arg10: memref<16x32xf32, #tpu.memory_space<vmem>>, %arg11: memref<16x32xf32, #tpu.memory_space<vmem>>, %arg12: memref<2x32xf32, #tpu.memory_space<vmem>>) attributes {dimension_semantics = [#tpu.dimension_semantics<arbitrary>], iteration_bounds = array<i64: 1>, scalar_prefetch = 0 : i64, scratch_operands = 4 : i64, tpu.core_type = #tpu.core_type<tc>, window_params = [{pipeline_mode = #tpu.pipeline_mode<synchronous>, transform_indices = @transform_0, window_bounds = array<i64: 16, 32>}, {pipeline_mode = #tpu.pipeline_mode<synchronous>, transform_indices = @transform_1, window_bounds = array<i64: 3, 32, 32>}, {pipeline_mode = #tpu.pipeline_mode<synchronous>, transform_indices = @transform_2, window_bounds = array<i64: 3, 32, 32>}, {pipeline_mode = #tpu.pipeline_mode<synchronous>, transform_indices = @transform_3, window_bounds = array<i64: 3, 1, 32>}, {pipeline_mode = #tpu.pipeline_mode<synchronous>, transform_indices = @transform_4, window_bounds = array<i64: 1, 32>}, {pipeline_mode = #tpu.pipeline_mode<synchronous>, transform_indices = @transform_5, window_bounds = array<i64: 32, 128>}, {pipeline_mode = #tpu.pipeline_mode<synchronous>, transform_indices = @transform_6, window_bounds = array<i64: 1, 128>}, {pipeline_mode = #tpu.pipeline_mode<synchronous>, transform_indices = @transform_7, window_bounds = array<i64: 2, 128>}]} {
    %c0 = arith.constant 0 : index
    %c0_0 = arith.constant 0 : index
    %0 = vector.load %arg1[%c0, %c0_0] : memref<16x32xbf16, #tpu.memory_space<vmem>>, vector<16x32xbf16>
    %c0_1 = arith.constant 0 : index
    %c0_2 = arith.constant 0 : index
    %c0_3 = arith.constant 0 : index
    %1 = vector.load %arg2[%c0_1, %c0_2, %c0_3] : memref<3x32x32xbf16, #tpu.memory_space<vmem>>, vector<1x32x32xbf16>
    %2 = vector.shape_cast %1 : vector<1x32x32xbf16> to vector<32x32xbf16>
    %cst = arith.constant dense<0.000000e+00> : vector<16x32xf32>
    %3 = tpu.matmul %0, %2, %cst {dimension_numbers = #tpu.dot_dimension_numbers<[1], [0], [0], [1], [0, 0, 1, 1], [], []>} : vector<16x32xbf16>, vector<32x32xbf16>, vector<16x32xf32> -> vector<16x32xf32>
    %c0_4 = arith.constant 0 : index
    %c0_5 = arith.constant 0 : index
    %c0_6 = arith.constant 0 : index
    %4 = vector.load %arg4[%c0_4, %c0_5, %c0_6] : memref<3x1x32xf32, #tpu.memory_space<vmem>>, vector<1x1x32xf32>
    %5 = vector.shape_cast %4 : vector<1x1x32xf32> to vector<1x32xf32>
    %6 = vector.broadcast %5 : vector<1x32xf32> to vector<16x32xf32>
    %7 = arith.addf %3, %6 : vector<16x32xf32>
    %c0_7 = arith.constant 0 : index
    %c0_8 = arith.constant 0 : index
    %8 = vector.load %arg9[%c0_7, %c0_8] : memref<16x32xf32, #tpu.memory_space<vmem>>, vector<16x32xf32>
    tpu.vector_store %arg9[%c0_7, %c0_8], %7 {strides = array<i32>} : memref<16x32xf32, #tpu.memory_space<vmem>>, vector<16x32xf32>,
    %c1 = arith.constant 1 : index
    %c0_9 = arith.constant 0 : index
    %c0_10 = arith.constant 0 : index
    %9 = vector.load %arg2[%c1, %c0_9, %c0_10] : memref<3x32x32xbf16, #tpu.memory_space<vmem>>, vector<1x32x32xbf16>
    %10 = vector.shape_cast %9 : vector<1x32x32xbf16> to vector<32x32xbf16>
    %cst_11 = arith.constant dense<0.000000e+00> : vector<16x32xf32>
    %11 = tpu.matmul %0, %10, %cst_11 {dimension_numbers = #tpu.dot_dimension_numbers<[1], [0], [0], [1], [0, 0, 1, 1], [], []>} : vector<16x32xbf16>, vector<32x32xbf16>, vector<16x32xf32> -> vector<16x32xf32>
    %c1_12 = arith.constant 1 : index
    %c0_13 = arith.constant 0 : index
    %c0_14 = arith.constant 0 : index
    %12 = vector.load %arg4[%c1_12, %c0_13, %c0_14] : memref<3x1x32xf32, #tpu.memory_space<vmem>>, vector<1x1x32xf32>
    %13 = vector.shape_cast %12 : vector<1x1x32xf32> to vector<1x32xf32>
    %14 = vector.broadcast %13 : vector<1x32xf32> to vector<16x32xf32>
    %15 = arith.addf %11, %14 : vector<16x32xf32>
    %c0_15 = arith.constant 0 : index
    %c0_16 = arith.constant 0 : index
    %16 = vector.load %arg10[%c0_15, %c0_16] : memref<16x32xf32, #tpu.memory_space<vmem>>, vector<16x32xf32>
    tpu.vector_store %arg10[%c0_15, %c0_16], %15 {strides = array<i32>} : memref<16x32xf32, #tpu.memory_space<vmem>>, vector<16x32xf32>,
    %c2 = arith.constant 2 : index
    %c0_17 = arith.constant 0 : index
    %c0_18 = arith.constant 0 : index
    %17 = vector.load %arg2[%c2, %c0_17, %c0_18] : memref<3x32x32xbf16, #tpu.memory_space<vmem>>, vector<1x32x32xbf16>
    %18 = vector.shape_cast %17 : vector<1x32x32xbf16> to vector<32x32xbf16>
    %cst_19 = arith.constant dense<0.000000e+00> : vector<16x32xf32>
    %19 = tpu.matmul %0, %18, %cst_19 {dimension_numbers = #tpu.dot_dimension_numbers<[1], [0], [0], [1], [0, 0, 1, 1], [], []>} : vector<16x32xbf16>, vector<32x32xbf16>, vector<16x32xf32> -> vector<16x32xf32>
    %c2_20 = arith.constant 2 : index
    %c0_21 = arith.constant 0 : index
    %c0_22 = arith.constant 0 : index
    %20 = vector.load %arg4[%c2_20, %c0_21, %c0_22] : memref<3x1x32xf32, #tpu.memory_space<vmem>>, vector<1x1x32xf32>
    %21 = vector.shape_cast %20 : vector<1x1x32xf32> to vector<1x32xf32>
    %22 = vector.broadcast %21 : vector<1x32xf32> to vector<16x32xf32>
    %23 = arith.addf %19, %22 : vector<16x32xf32>
    %c0_23 = arith.constant 0 : index
    %c0_24 = arith.constant 0 : index
    %24 = vector.load %arg11[%c0_23, %c0_24] : memref<16x32xf32, #tpu.memory_space<vmem>>, vector<16x32xf32>
    tpu.vector_store %arg11[%c0_23, %c0_24], %23 {strides = array<i32>} : memref<16x32xf32, #tpu.memory_space<vmem>>, vector<16x32xf32>,
    %c0_25 = arith.constant 0 : index
    %c0_26 = arith.constant 0 : index
    %c0_27 = arith.constant 0 : index
    %25 = vector.load %arg3[%c0_25, %c0_26, %c0_27] : memref<3x32x32xbf16, #tpu.memory_space<vmem>>, vector<1x32x32xbf16>
    %26 = vector.shape_cast %25 : vector<1x32x32xbf16> to vector<32x32xbf16>
    %c1_28 = arith.constant 1 : index
    %c0_29 = arith.constant 0 : index
    %c0_30 = arith.constant 0 : index
    %27 = vector.load %arg3[%c1_28, %c0_29, %c0_30] : memref<3x32x32xbf16, #tpu.memory_space<vmem>>, vector<1x32x32xbf16>
    %28 = vector.shape_cast %27 : vector<1x32x32xbf16> to vector<32x32xbf16>
    %c2_31 = arith.constant 2 : index
    %c0_32 = arith.constant 0 : index
    %c0_33 = arith.constant 0 : index
    %29 = vector.load %arg3[%c2_31, %c0_32, %c0_33] : memref<3x32x32xbf16, #tpu.memory_space<vmem>>, vector<1x32x32xbf16>
    %30 = vector.shape_cast %29 : vector<1x32x32xbf16> to vector<32x32xbf16>
    %c0_34 = arith.constant 0 : index
    %c0_35 = arith.constant 0 : index
    %31 = vector.load %arg5[%c0_34, %c0_35] : memref<1x32xf32, #tpu.memory_space<vmem>>, vector<1x32xf32>
    %cst_36 = arith.constant 0.000000e+00 : f32
    %32 = vector.broadcast %cst_36 : f32 to vector<2x32xf32>
    %c0_37 = arith.constant 0 : index
    %c0_38 = arith.constant 0 : index
    %33 = vector.load %arg12[%c0_37, %c0_38] : memref<2x32xf32, #tpu.memory_space<vmem>>, vector<2x32xf32>
    tpu.vector_store %arg12[%c0_37, %c0_38], %32 {strides = array<i32>} : memref<2x32xf32, #tpu.memory_space<vmem>>, vector<2x32xf32>,
    %c0_i32 = arith.constant 0 : i32
    %c8_i32 = arith.constant 8 : i32
    %34 = arith.addi %c0_i32, %c8_i32 : i32
    %c1_i32 = arith.constant 1 : i32
    scf.for %arg13 = %c0_i32 to %34 step %c1_i32  : i32 {
      %c1_i32_49 = arith.constant 1 : i32
      %43 = arith.muli %arg13, %c1_i32_49 : i32
      %c0_i32_50 = arith.constant 0 : i32
      %44 = arith.addi %c0_i32_50, %43 : i32
      %c2_i32 = arith.constant 2 : i32
      %45 = arith.muli %44, %c2_i32 : i32
      %46 = arith.index_cast %45 : i32 to index
      %c0_51 = arith.constant 0 : index
      %47 = vector.load %arg9[%46, %c0_51] : memref<16x32xf32, #tpu.memory_space<vmem>>, vector<2x32xf32>
      %48 = arith.index_cast %45 : i32 to index
      %c0_52 = arith.constant 0 : index
      %49 = vector.load %arg10[%48, %c0_52] : memref<16x32xf32, #tpu.memory_space<vmem>>, vector<2x32xf32>
      %50 = arith.index_cast %45 : i32 to index
      %c0_53 = arith.constant 0 : index
      %51 = vector.load %arg11[%50, %c0_53] : memref<16x32xf32, #tpu.memory_space<vmem>>, vector<2x32xf32>
      %c0_54 = arith.constant 0 : index
      %c0_55 = arith.constant 0 : index
      %52 = vector.load %arg12[%c0_54, %c0_55] : memref<2x32xf32, #tpu.memory_space<vmem>>, vector<2x32xf32>
      %53 = arith.truncf %52 : vector<2x32xf32> to vector<2x32xbf16>
      %cst_56 = arith.constant dense<0.000000e+00> : vector<2x32xf32>
      %54 = tpu.matmul %53, %26, %cst_56 {dimension_numbers = #tpu.dot_dimension_numbers<[1], [0], [0], [1], [0, 0, 1, 1], [], []>} : vector<2x32xbf16>, vector<32x32xbf16>, vector<2x32xf32> -> vector<2x32xf32>
      %cst_57 = arith.constant dense<0.000000e+00> : vector<2x32xf32>
      %55 = tpu.matmul %53, %28, %cst_57 {dimension_numbers = #tpu.dot_dimension_numbers<[1], [0], [0], [1], [0, 0, 1, 1], [], []>} : vector<2x32xbf16>, vector<32x32xbf16>, vector<2x32xf32> -> vector<2x32xf32>
      %cst_58 = arith.constant dense<0.000000e+00> : vector<2x32xf32>
      %56 = tpu.matmul %53, %30, %cst_58 {dimension_numbers = #tpu.dot_dimension_numbers<[1], [0], [0], [1], [0, 0, 1, 1], [], []>} : vector<2x32xbf16>, vector<32x32xbf16>, vector<2x32xf32> -> vector<2x32xf32>
      %57 = arith.addf %47, %54 : vector<2x32xf32>
      %58 = arith.negf %57 : vector<2x32xf32>
      %59 = math.exp %58 : vector<2x32xf32>
      %cst_59 = arith.constant 1.000000e+00 : f32
      %60 = vector.broadcast %cst_59 : f32 to vector<2x32xf32>
      %61 = arith.addf %60, %59 : vector<2x32xf32>
      %62 = arith.divf %60, %61 : vector<2x32xf32>
      %63 = arith.addf %49, %55 : vector<2x32xf32>
      %64 = arith.negf %63 : vector<2x32xf32>
      %65 = math.exp %64 : vector<2x32xf32>
      %cst_60 = arith.constant 1.000000e+00 : f32
      %66 = vector.broadcast %cst_60 : f32 to vector<2x32xf32>
      %67 = arith.addf %66, %65 : vector<2x32xf32>
      %68 = arith.divf %66, %67 : vector<2x32xf32>
      %69 = vector.broadcast %31 : vector<1x32xf32> to vector<2x32xf32>
      %70 = arith.addf %56, %69 : vector<2x32xf32>
      %71 = arith.mulf %62, %70 : vector<2x32xf32>
      %72 = arith.addf %51, %71 : vector<2x32xf32>
      %73 = math.tanh %72 : vector<2x32xf32>
      %74 = arith.subf %52, %73 : vector<2x32xf32>
      %75 = arith.mulf %68, %74 : vector<2x32xf32>
      %76 = arith.addf %73, %75 : vector<2x32xf32>
      %c0_61 = arith.constant 0 : index
      %c0_62 = arith.constant 0 : index
      %77 = vector.load %arg12[%c0_61, %c0_62] : memref<2x32xf32, #tpu.memory_space<vmem>>, vector<2x32xf32>
      tpu.vector_store %arg12[%c0_61, %c0_62], %76 {strides = array<i32>} : memref<2x32xf32, #tpu.memory_space<vmem>>, vector<2x32xf32>,
    }
    %c8_i32_39 = arith.constant 8 : i32
    %c0_40 = arith.constant 0 : index
    %c0_41 = arith.constant 0 : index
    %35 = vector.load %arg12[%c0_40, %c0_41] : memref<2x32xf32, #tpu.memory_space<vmem>>, vector<2x32xf32>
    %36 = arith.truncf %35 : vector<2x32xf32> to vector<2x32xbf16>
    %c0_42 = arith.constant 0 : index
    %c0_43 = arith.constant 0 : index
    %37 = vector.load %arg6[%c0_42, %c0_43] : memref<32x128xbf16, #tpu.memory_space<vmem>>, vector<32x128xbf16>
    %cst_44 = arith.constant dense<0.000000e+00> : vector<2x128xf32>
    %38 = tpu.matmul %36, %37, %cst_44 {dimension_numbers = #tpu.dot_dimension_numbers<[1], [0], [0], [1], [0, 0, 1, 1], [], []>} : vector<2x32xbf16>, vector<32x128xbf16>, vector<2x128xf32> -> vector<2x128xf32>
    %c0_45 = arith.constant 0 : index
    %c0_46 = arith.constant 0 : index
    %39 = vector.load %arg7[%c0_45, %c0_46] : memref<1x128xf32, #tpu.memory_space<vmem>>, vector<1x128xf32>
    %40 = vector.broadcast %39 : vector<1x128xf32> to vector<2x128xf32>
    %41 = arith.addf %38, %40 : vector<2x128xf32>
    %c0_47 = arith.constant 0 : index
    %c0_48 = arith.constant 0 : index
    %42 = vector.load %arg8[%c0_47, %c0_48] : memref<2x128xf32, #tpu.memory_space<vmem>>, vector<2x128xf32>
    tpu.vector_store %arg8[%c0_47, %c0_48], %41 {strides = array<i32>} : memref<2x128xf32, #tpu.memory_space<vmem>>, vector<2x128xf32>,
    return
  }
  func.func @transform_0(%arg0: i32) -> (i32, i32) {
    %c0_i32 = arith.constant 0 : i32
    %c0_i32_0 = arith.constant 0 : i32
    %c0_i32_1 = arith.constant 0 : i32
    return %c0_i32, %c0_i32_0 : i32, i32
  }
  func.func @transform_1(%arg0: i32) -> (i32, i32, i32) {
    %c0_i32 = arith.constant 0 : i32
    %c0_i32_0 = arith.constant 0 : i32
    %c0_i32_1 = arith.constant 0 : i32
    %c0_i32_2 = arith.constant 0 : i32
    return %c0_i32, %c0_i32_0, %c0_i32_1 : i32, i32, i32
  }
  func.func @transform_2(%arg0: i32) -> (i32, i32, i32) {
    %c0_i32 = arith.constant 0 : i32
    %c0_i32_0 = arith.constant 0 : i32
    %c0_i32_1 = arith.constant 0 : i32
    %c0_i32_2 = arith.constant 0 : i32
    return %c0_i32, %c0_i32_0, %c0_i32_1 : i32, i32, i32
  }
  func.func @transform_3(%arg0: i32) -> (i32, i32, i32) {
    %c0_i32 = arith.constant 0 : i32
    %c0_i32_0 = arith.constant 0 : i32
    %c0_i32_1 = arith.constant 0 : i32
    %c0_i32_2 = arith.constant 0 : i32
    return %c0_i32, %c0_i32_0, %c0_i32_1 : i32, i32, i32
  }
  func.func @transform_4(%arg0: i32) -> (i32, i32) {
    %c0_i32 = arith.constant 0 : i32
    %c0_i32_0 = arith.constant 0 : i32
    %c0_i32_1 = arith.constant 0 : i32
    return %c0_i32, %c0_i32_0 : i32, i32
  }
  func.func @transform_5(%arg0: i32) -> (i32, i32) {
    %c0_i32 = arith.constant 0 : i32
    %c0_i32_0 = arith.constant 0 : i32
    %c0_i32_1 = arith.constant 0 : i32
    return %c0_i32, %c0_i32_0 : i32, i32
  }
  func.func @transform_6(%arg0: i32) -> (i32, i32) {
    %c0_i32 = arith.constant 0 : i32
    %c0_i32_0 = arith.constant 0 : i32
    %c0_i32_1 = arith.constant 0 : i32
    return %c0_i32, %c0_i32_0 : i32, i32
  }
  func.func @transform_7(%arg0: i32) -> (i32, i32) {
    %c0_i32 = arith.constant 0 : i32
    %c0_i32_0 = arith.constant 0 : i32
    %c0_i32_1 = arith.constant 0 : i32
    return %c0_i32, %c0_i32_0 : i32, i32
  }
}

</mosaic_0001>

<bundles_post_ra>
// kernel: rnn_classifier_forward.1
= control target key start
LH: loop header
LB: loop body
LE: loop exit
PB: predicated region body
PF: predicated region fallthrough
CT: control target
= control target key end

     0   :  { %vm255_vm0 = vcmask 254976   ;;  %v706_v0 = vmov 0.0   ;;  %vm707_vm1 = vmmov 0   ;;  %vm57_vm2 = vcmask 261120   ;;  %s868_s18 = smov 0   ;;  %s919_s5 = inlined_call_operand.vmem [shape: bf16[32,128], index: 5, kind: input, shape index: {}]   ;;  %s920_s6 = inlined_call_operand.vmem [shape: f32[1,128], index: 6, kind: input, shape index: {}]   ;;  %s921_s7 = inlined_call_operand.vmem [shape: f32[2,128], index: 7, kind: output, shape index: {}]   ;;  %s922_s1 = inlined_call_operand.vmem [shape: bf16[3,32,32], index: 1, kind: input, shape index: {}]   ;;  %s923_s0 = inlined_call_operand.vmem [shape: bf16[16,32], index: 0, kind: input, shape index: {}]   ;;  %s924_s2 = inlined_call_operand.vmem [shape: bf16[3,32,32], index: 2, kind: input, shape index: {}]   ;;  %s925_s4 = inlined_call_operand.vmem [shape: f32[1,32], index: 4, kind: input, shape index: {}]   ;;  %s926_s3 = inlined_call_operand.vmem [shape: f32[3,1,32], index: 3, kind: input, shape index: {}]  }
   0x1   :  { %611 = vmatprep.subr.bf16.mxu0 %v706_v0  ;;  %256 = vst.msk [vmem:[#allocation5] sm:$0x3] %vm255_vm0, %v706_v0  ;;  %v679_v1 = vld [vmem:[%s922_s1] sm:$0xff]   ;;  %619 = vmatprep.subr.bf16.mxu1 %v706_v0  ;;  %v680_v2 = vld [vmem:[%s922_s1 + $0x8] sm:$0xff]   ;;  %v681_v3 = vld [vmem:[%s922_s1 + $0x10] sm:$0xff]  }
   0x2   :  { %615 = vmatprep.mubr.msk.bf16.mxu0 %vm707_vm1, %v706_v0  ;;  %623 = vmatprep.mubr.msk.bf16.mxu1 %vm707_vm1, %v706_v0  ;;  %v682_v4 = vld [vmem:[%s923_s0] sm:$0xff]   ;;  %v684_v5 = vld [vmem:[%s922_s1 + $0x18] sm:$0xff]   ;;  %v685_v7 = vld [vmem:[%s922_s1 + $0x28] sm:$0xff]  }
   0x3   :  { %612 = vmatpush3.bf16.msra.mxu0 %v679_v1  ;;  %620 = vmatpush3.bf16.msra.mxu1 %v681_v3  ;;  %v683_v6 = vld [vmem:[%s922_s1 + $0x20] sm:$0xff]   ;;  %v801_v10 = vld [vmem:[%s924_s2 + $0x8] sm:$0xf]  ;;  %v806_v11 = vld [vmem:[%s924_s2 + $0xc] sm:$0xf] }
   0x4   :  { %613 = vmatprep.subr.bf16.mxu0 %v706_v0  ;;  %621 = vmatprep.subr.bf16.mxu1 %v706_v0  ;;  %v791_v8 = vld [vmem:[%s924_s2] sm:$0xf]  ;;  %v796_v9 = vld [vmem:[%s924_s2 + $0x4] sm:$0xf]  ;;  %v811_v12 = vld [vmem:[%s924_s2 + $0x10] sm:$0xf] }
   0x5   :  { %v816_v13 = vld [vmem:[%s924_s2 + $0x14] sm:$0xf]  ;;  %v821_v14 = vld [vmem:[%s924_s2 + $0x18] sm:$0xf]  ;;  %v826_v15 = vld [vmem:[%s924_s2 + $0x1c] sm:$0xf] }
   0x6   :  { %v831_v16 = vld [vmem:[%s924_s2 + $0x20] sm:$0xf]  ;;  %v836_v17 = vld [vmem:[%s924_s2 + $0x24] sm:$0xf]  ;;  %v841_v18 = vld [vmem:[%s924_s2 + $0x28] sm:$0xf] }
   0x7   :  { %614 = vmatpush3.bf16.msra.mxu0 %v680_v2  ;;  %622 = vmatpush3.bf16.msra.mxu1 %v684_v5  ;;  %v846_v19 = vld [vmem:[%s924_s2 + $0x2c] sm:$0xf]  ;;  %v851_v20 = vld [vmem:[%s925_s4] ss:$0 sm:$0xff]  ;;  %v552_v23 = vld [vmem:[%s926_s3 + $0x1] ss:$0 sm:$0xff] }
   0x8   :  { %627 = vmatprep.subr.bf16.mxu0 %v706_v0  ;;  %v542_v21 = vld [vmem:[%s926_s3] ss:$0 sm:$0xff]  ;;  %v561_v35 = vld [vmem:[%s926_s3 + $0x2] ss:$0 sm:$0xff] }
   0xa   :  { %616 = vmatmul.mubr.msk.bf16.vlgmr.msra.gmra.mrb[0].mxu0 %vm57_vm2, %v682_v4  ;;  %624 = vmatmul.mubr.msk.bf16.vlgmr.msra.gmra.mrb[0].mxu1 %vm57_vm2, %v682_v4 }
   0xb   :  { %628 = vmatpush3.bf16.msra.mxu0 %v683_v6  ;;  %631 = vmatprep.mubr.msk.bf16.mxu0 %vm707_vm1, %v706_v0 }
   0xc   :  { %629 = vmatprep.subr.bf16.mxu0 %v706_v0 }
   0xf   :  { %630 = vmatpush3.bf16.msra.mxu0 %v685_v7 }
  0x12   :  { %632 = vmatmul.mubr.msk.bf16.vlgmr.msra.gmra.mrb[4].mxu0 %vm57_vm2, %v682_v4 }
  0xdd   :  { %v95_v22 = vpop.f32.mrb[0].mxu0  ;;  %v163_v27 = vpop.f32.mrb[0].mxu1 }
  0xde   :  { %v96_v24 = vadd.f32 %v542_v21, %v95_v22  ;;  %v617_v25 = vpop.f32.mrb[1].mxu0  ;;  %v164_v30 = vadd.f32 %v552_v23, %v163_v27  ;;  %v625_v31 = vpop.f32.mrb[1].mxu1 }
  0xdf   :  { %v98_v26 = vpop.f32.mrb[2].mxu0  ;;  %v166_v32 = vpop.f32.mrb[2].mxu1 }
  0xe0   :  { %102 = vst.msk [vmem:[#allocation2] sm:$0xff] %vm57_vm2, %v96_v24  ;;  %v99_v28 = vadd.f32 %v542_v21, %v98_v26  ;;  %v618_v29 = vpop.f32.mrb[3].mxu0  ;;  %170 = vst.msk [vmem:[#allocation3] sm:$0xff] %vm57_vm2, %v164_v30  ;;  %v167_v33 = vadd.f32 %v552_v23, %v166_v32  ;;  %v626_v34 = vpop.f32.mrb[3].mxu1 }
  0xe2   :  { %103 = vst.msk [vmem:[#allocation2 + $0x8] sm:$0xff] %vm57_vm2, %v99_v28  ;;  %171 = vst.msk [vmem:[#allocation3 + $0x8] sm:$0xff] %vm57_vm2, %v167_v33 }
  0xe5   :  { %v231_v36 = vpop.f32.mrb[4].mxu0 }
  0xe6   :  { %v232_v37 = vadd.f32 %v561_v35, %v231_v36  ;;  %v633_v38 = vpop.f32.mrb[5].mxu0 }
  0xe7   :  { %v234_v39 = vpop.f32.mrb[6].mxu0 }
  0xe8   :  { %238 = vst.msk [vmem:[#allocation4] sm:$0xff] %vm57_vm2, %v232_v37  ;;  %v235_v40 = vadd.f32 %v561_v35, %v234_v39  ;;  %v634_v41 = vpop.f32.mrb[7].mxu0 }
  0xea   :  { %239 = vst.msk [vmem:[#allocation4 + $0x8] sm:$0xff] %vm57_vm2, %v235_v40 }
  0xeb LB: > { %v574_v42 = vcombine.low %v791_v8, %v796_v9  ;;  %v708_v43 = vmov 0.0   ;;  %vm709_vm3 = vmmov 0   ;;  %v577_v44 = vcombine.low %v811_v12, %v816_v13  ;;  %v270_v46 = vld [vmem:[#allocation5] sm:$0x3]  ;;  %s892_s3 = sshll.u32 %s704_s18, 1  ;;  %s262_s18 = sadd.s32 1, %s704_s18   ;;  %s704_s18 = sphi %s868_s18, %s262_s18  }
  0xec   : > { %635 = vmatprep.subr.bf16.mxu0 %v708_v43  ;;  %639 = vmatprep.mubr.msk.bf16.mxu0 %vm709_vm3, %v708_v43  ;;  %v575_v45 = vcombine.low %v801_v10, %v806_v11  ;;  %v578_v47 = vcombine.low %v821_v14, %v826_v15  ;;  %v271_v48 = vpack.c.bf16 %v270_v46, %v270_v46  ;;  %s264_s19 = scalar_lea.vmem [#allocation2], %s892_s3  ;;  %s266_s20 = scalar_lea.vmem [#allocation3], %s892_s3 }
  0xed   : > { %636 = vmatpush3.bf16.msra.mxu0 %v574_v42  ;;  %643 = vmatprep.subr.bf16.mxu1 %v708_v43  ;;  %v583_v49 = vcombine.low %v831_v16, %v836_v17  ;;  %v584_v50 = vcombine.low %v841_v18, %v846_v19  ;;  %v265_v51 = vld [vmem:[%s264_s19] sm:$0x3]  ;;  %s268_s21 = scalar_lea.vmem [#allocation4], %s892_s3  ;;  %p259_p0 = scmp.ge.s32.totalorder %s262_s18, 8  }
  0xee   : > { %637 = vmatprep.subr.bf16.mxu0 %v708_v43  ;;  %644 = vmatpush3.bf16.msra.mxu1 %v577_v44  ;;  %v267_v61 = vld [vmem:[%s266_s20] sm:$0x3]  ;;  %v697_v34 = vld [vmem:[%s919_s5 + $0x8] sm:$0xff] (%p259_p0)  }
  0xef   : > { %645 = vmatprep.subr.bf16.mxu1 %v708_v43  ;;  %647 = vmatprep.mubr.msk.bf16.mxu1 %vm709_vm3, %v708_v43  ;;  %v696_v33 = vld [vmem:[%s919_s5] sm:$0xff] (%p259_p0)  }
  0xf0   :  { %v586_v8 = vld [vmem:[%s920_s6] ss:$0 sm:$0xff] (%p259_p0) }
  0xf1   : > { %638 = vmatpush3.bf16.msra.mxu0 %v575_v45  ;;  %v269_v25 = vld [vmem:[%s268_s21] sm:$0x3] }
  0xf2   : > { %646 = vmatpush3.bf16.msra.mxu1 %v578_v47  ;;  %651 = vmatprep.subr.bf16.mxu0 %v708_v43 }
  0xf4   : > { %640 = vmatmul.mubr.msk.bf16.vlgmr.msra.gmra.mrb[0].mxu0 %vm57_vm2, %v271_v48 }
  0xf5   : > { %648 = vmatmul.mubr.msk.bf16.vlgmr.msra.gmra.mrb[0].mxu1 %vm57_vm2, %v271_v48  ;;  %652 = vmatpush3.bf16.msra.mxu0 %v583_v49 }
  0xf6   : > { %653 = vmatprep.subr.bf16.mxu0 %v708_v43  ;;  %655 = vmatprep.mubr.msk.bf16.mxu0 %vm709_vm3, %v708_v43 }
  0xf9   : > { %654 = vmatpush3.bf16.msra.mxu0 %v584_v50 }
  0xfa   :  { %659 = vmatprep.subr.bf16.mxu0 (%p259_p0), %v706_v0 }
  0xfc   : > { %656 = vmatmul.mubr.msk.bf16.vlgmr.msra.gmra.mrb[4].mxu0 %vm57_vm2, %v271_v48 }
  0xfd   :  { %663 = vmatprep.mubr.msk.bf16.mxu0 (%p259_p0), %vm707_vm1, %v706_v0  ;;  %660 = vmatpush3.bf16.msra.mxu0 (%p259_p0), %v696_v33 }
  0xfe   :  { %661 = vmatprep.subr.bf16.mxu0 (%p259_p0), %v706_v0 }
 0x101   :  { %662 = vmatpush3.bf16.msra.mxu0 (%p259_p0), %v697_v34 }
 0x1c7   : > { %v321_v52 = vpop.f32.mrb[0].mxu0 }
 0x1c8   : > { %v379_v53 = vadd.f32 %v321_v52, %v265_v51  ;;  %v641_v54 = vpop.f32.mrb[1].mxu0  ;;  %v373_v55 = vpop.f32.mrb[0].mxu1 }
 0x1c9   : > { %v324_v56 = vpop.f32.mrb[2].mxu0  ;;  %v649_v57 = vpop.f32.mrb[1].mxu1  ;;  %v386_v63 = vadd.f32 %v373_v55, %v267_v61 }
 0x1ca   : > { %v580_v58 = vmul.f32 -1.442695, %v379_v53  ;;  %v642_v59 = vpop.f32.mrb[3].mxu0  ;;  %v376_v60 = vpop.f32.mrb[2].mxu1 }
 0x1cb   : > { %v650_v62 = vpop.f32.mrb[3].mxu1  ;;  %v581_v4 = vmul.f32 -1.442695, %v386_v63 }
 0x1cc   : > { %686 = vpow2.f32 %v580_v58 }
 0x1cd   : > { %688 = vpow2.f32 %v581_v4 }
 0x1cf   : > { %v445_v1 = vpop.f32.mrb[4].mxu0 }
 0x1d0   : > { %v657_v2 = vpop.f32.mrb[5].mxu0  ;;  %v446_v22 = vadd.f32 %v851_v20, %v445_v1 }
 0x1d1   : > { %v448_v3 = vpop.f32.mrb[6].mxu0 }
 0x1d2   : > { %v658_v5 = vpop.f32.mrb[7].mxu0 }
 0x1d6   : > { %v687_v6 = vpop.eup %686 }
 0x1d7   : > { %v383_v7 = vadd.f32 1.0, %v687_v6  ;;  %v689_v21 = vpop.eup %688 }
 0x1d8   : > { %v390_v24 = vadd.f32 1.0, %v689_v21 }
 0x1d9   : > { %690 = vrcp.f32 %v383_v7 }
 0x1da   : > { %692 = vrcp.f32 %v390_v24 }
 0x1e3   : > { %v691_v23 = vpop.eup %690 }
 0x1e4   : > { %v451_v26 = vmul.f32 %v691_v23, %v446_v22  ;;  %v693_v28 = vpop.eup %692 }
 0x1e6   : > { %v452_v27 = vadd.f32 %v451_v26, %v269_v25 }
 0x1e8   : > { %694 = vtanh.f32 %v452_v27 }
 0x1f2   : > { %v695_v29 = vpop.eup %694 }
 0x1f3   : > { %v454_v30 = vsub.f32 %v270_v46, %v695_v29  ;;  %261 = sbr.rel (!%p259_p0) target bundleno = 235 (0xeb), region = 64 }
 0x1f5   : > { %v455_v31 = vmul.f32 %v693_v28, %v454_v30 }
 0x1f7   : > { %v456_v32 = vadd.f32 %v695_v29, %v455_v31 }
 0x1f9   : > { %457 = vst.msk [vmem:[#allocation5] sm:$0x3] %vm255_vm0, %v456_v32 }
 0x200   :  { %v458_v35 = vld [vmem:[#allocation5] sm:$0x3] }
 0x201   :  { %v459_v36 = vpack.c.bf16 %v458_v35, %v458_v35 }
 0x203   :  { %664 = vmatmul.mubr.msk.bf16.vlgmr.msra.gmra.mrb[0].mxu0 %vm57_vm2, %v459_v36 }
 0x2d6   :  { %v520_v9 = vpop.f32.mrb[0].mxu0 }
 0x2d7   :  { %v521_v10 = vadd.f32 %v586_v8, %v520_v9  ;;  %v665_v11 = vpop.f32.mrb[1].mxu0 }
 0x2d8   :  { %v523_v12 = vpop.f32.mrb[2].mxu0 }
 0x2d9   :  { %526 = vst [vmem:[%s921_s7] sm:$0x3] %v521_v10  ;;  %v666_v13 = vpop.f32.mrb[3].mxu0 }

</bundles_post_ra>
